<compile_context>
chip_gen: v5e
topology: v5e:2x2
jax: 0.10.0
libtpu: 0.0.40
codegen_flags: <defaults>
</compile_context>

<pallas_src>
import functools

import jax
import jax.numpy as jnp
from jax.experimental import pallas as pl
from jax.experimental.pallas import tpu as pltpu


def se_kernel(x_ref, w1t_ref, b1_ref, w2_ref, b2_ref, o_ref, *,
              inv_hw, negative_slope):
    # x_ref: (C, HWp) block for one batch element (HWp lane-padded with zeros).
    x = x_ref[...]
    xf = x.astype(jnp.float32)                                   # (C, HWp)

    # Global average pool over true HW (padded lanes are zero).
    pool = jnp.sum(xf, axis=-1, keepdims=True) * inv_hw          # (C, 1)

    # fc1 + LeakyReLU: contraction over C (sublanes) — VPU mul + XLU reduce.
    h = jnp.sum(w1t_ref[...] * pool, axis=0, keepdims=True) + b1_ref[...]   # (1, Cr)
    h = jnp.where(h > 0, h, negative_slope * h)

    # fc2 + sigmoid: contraction over Cr (lanes) — VPU mul + XLU reduce.
    s = jnp.sum(w2_ref[...] * h, axis=-1, keepdims=True) + b2_ref[...]      # (C, 1)
    gate = jax.nn.sigmoid(s)                                                # (C, 1)

    # Single fused gate application (one full-tile multiply, lane-dense store).
    o_ref[...] = (xf * gate).astype(o_ref.dtype)


def se_layer(x, w1, b1, w2, b2, negative_slope=0.2):
    """x: (B, C, H, W).  PyTorch parameter layouts:
       w1: (Cr, C) = Linear(C, Cr).weight,  b1: (Cr,)
       w2: (C, Cr) = Linear(Cr, C).weight,  b2: (C,)"""
    B, C, H, W = x.shape
    HW = H * W
    Cr = w1.shape[0]
    HWp = ((HW + 127) // 128) * 128          # lane-dense stores

    x_flat = x.reshape(B, C, HW)
    if HWp != HW:
        x_flat = jnp.pad(x_flat, ((0, 0), (0, 0), (0, HWp - HW)))

    # Weight layouts chosen so the tiny MLP needs no transposes and no MXU.
    w1t = jnp.asarray(w1, jnp.float32).T                 # (C, Cr)
    b1r = jnp.asarray(b1, jnp.float32).reshape(1, Cr)    # (1, Cr)
    w2m = jnp.asarray(w2, jnp.float32)                   # (C, Cr)
    b2c = jnp.asarray(b2, jnp.float32).reshape(C, 1)     # (C, 1)

    kernel = functools.partial(
        se_kernel, inv_hw=1.0 / HW, negative_slope=negative_slope)

    # Double-buffered input + output blocks per grid step, plus headroom.
    block_bytes = C * HWp * x.dtype.itemsize
    vmem_limit = int(min(max(4 * block_bytes + (1 << 20), 32 << 20), 100 << 20))

    out = pl.pallas_call(
        kernel,
        out_shape=jax.ShapeDtypeStruct((B, C, HWp), x.dtype),
        grid_spec=pltpu.PrefetchScalarGridSpec(
            num_scalar_prefetch=0,
            grid=(B,),
            in_specs=[
                pl.BlockSpec((None, C, HWp), lambda b: (b, 0, 0)),  # x (batch squeezed)
                pl.BlockSpec((C, Cr), lambda b: (0, 0)),            # W1^T
                pl.BlockSpec((1, Cr), lambda b: (0, 0)),            # b1
                pl.BlockSpec((C, Cr), lambda b: (0, 0)),            # W2
                pl.BlockSpec((C, 1), lambda b: (0, 0)),             # b2
            ],
            out_specs=pl.BlockSpec((None, C, HWp), lambda b: (b, 0, 0)),
        ),
        compiler_params=pltpu.CompilerParams(
            dimension_semantics=("parallel",),
            vmem_limit_bytes=vmem_limit,
        ),
    )(x_flat, w1t, b1r, w2m, b2c)

    if HWp != HW:
        out = out[:, :, :HW]
    return out.reshape(B, C, H, W)


def se_reference(x, w1, b1, w2, b2, negative_slope=0.2):
    """Pure-JAX reference mirroring the PyTorch forward."""
    pool = jnp.mean(x, axis=(2, 3))                       # (B, C)
    h = pool @ w1.T + b1                                  # (B, Cr)
    h = jnp.where(h > 0, h, negative_slope * h)           # LeakyReLU(0.2)
    y = jax.nn.sigmoid(h @ w2.T + b2)                     # (B, C)
    return x * y[:, :, None, None]


if __name__ == "__main__":
    B, C, H, W = 2, 32, 16, 16
    reduction = 16
    Cr = C // reduction  # 2

    key = jax.random.PRNGKey(0)
    kx, k1, k2, k3, k4 = jax.random.split(key, 5)

    x = jax.random.normal(kx, (B, C, H, W), dtype=jnp.float32)
    w1 = jax.random.normal(k1, (Cr, C), dtype=jnp.float32) * 0.1   # Linear(C, Cr).weight
    b1 = jax.random.normal(k2, (Cr,), dtype=jnp.float32) * 0.1     # Linear(C, Cr).bias
    w2 = jax.random.normal(k3, (C, Cr), dtype=jnp.float32) * 0.1   # Linear(Cr, C).weight
    b2 = jax.random.normal(k4, (C,), dtype=jnp.float32) * 0.1      # Linear(Cr, C).bias

    # f32 path (tight correctness check).
    out = jax.block_until_ready(se_layer(x, w1, b1, w2, b2))
    ref = se_reference(x, w1, b1, w2, b2)
    assert out.shape == (B, C, H, W)
    assert jnp.allclose(out, ref, atol=1e-5, rtol=1e-5), "f32 mismatch vs reference"

    # bf16 activation path (halves HBM traffic; gate math stays f32 in-kernel).
    out_bf16 = jax.block_until_ready(se_layer(x.astype(jnp.bfloat16), w1, b1, w2, b2))
    assert out_bf16.dtype == jnp.bfloat16
    assert jnp.allclose(out_bf16.astype(jnp.float32), ref, atol=5e-2, rtol=5e-2), \
        "bf16 mismatch vs reference"

    # Non-multiple-of-128 spatial shape exercises the lane-padding path.
    x_odd = jax.random.normal(kx, (B, C, 7, 7), dtype=jnp.float32)
    out_odd = jax.block_until_ready(se_layer(x_odd, w1, b1, w2, b2))
    ref_odd = se_reference(x_odd, w1, b1, w2, b2)
    assert jnp.allclose(out_odd, ref_odd, atol=1e-5, rtol=1e-5), "padded-HW mismatch"

    print("KERNEL_OK")
</pallas_src>

<mosaic_0001>
module attributes {stable_mosaic.version = 11 : i64} {
  func.func @se_kernel(%arg0: i32, %arg1: memref<1x32x256xf32, #tpu.memory_space<vmem>>, %arg2: memref<32x2xf32, #tpu.memory_space<vmem>>, %arg3: memref<1x2xf32, #tpu.memory_space<vmem>>, %arg4: memref<32x2xf32, #tpu.memory_space<vmem>>, %arg5: memref<32x1xf32, #tpu.memory_space<vmem>>, %arg6: memref<1x32x256xf32, #tpu.memory_space<vmem>>) attributes {dimension_semantics = [#tpu.dimension_semantics<parallel>], iteration_bounds = array<i64: 2>, scalar_prefetch = 0 : i64, scratch_operands = 0 : i64, tpu.core_type = #tpu.core_type<tc>, window_params = [{transform_indices = @transform_0, window_bounds = array<i64: 1, 32, 256>}, {pipeline_mode = #tpu.pipeline_mode<synchronous>, transform_indices = @transform_1, window_bounds = array<i64: 32, 2>}, {pipeline_mode = #tpu.pipeline_mode<synchronous>, transform_indices = @transform_2, window_bounds = array<i64: 1, 2>}, {pipeline_mode = #tpu.pipeline_mode<synchronous>, transform_indices = @transform_3, window_bounds = array<i64: 32, 2>}, {pipeline_mode = #tpu.pipeline_mode<synchronous>, transform_indices = @transform_4, window_bounds = array<i64: 32, 1>}, {transform_indices = @transform_5, window_bounds = array<i64: 1, 32, 256>}]} {
    %c0 = arith.constant 0 : index
    %c0_0 = arith.constant 0 : index
    %c0_1 = arith.constant 0 : index
    %0 = vector.load %arg1[%c0, %c0_0, %c0_1] : memref<1x32x256xf32, #tpu.memory_space<vmem>>, vector<1x32x256xf32>
    %1 = vector.shape_cast %0 : vector<1x32x256xf32> to vector<32x256xf32>
    %cst = arith.constant dense<0.000000e+00> : vector<32xf32>
    %2 = vector.multi_reduction <add>, %1, %cst [1] : vector<32x256xf32> to vector<32xf32>
    %3 = vector.shape_cast %2 : vector<32xf32> to vector<32x1xf32>
    %cst_2 = arith.constant 3.906250e-03 : f32
    %4 = vector.broadcast %cst_2 : f32 to vector<32x1xf32>
    %5 = arith.mulf %3, %4 : vector<32x1xf32>
    %c0_3 = arith.constant 0 : index
    %c0_4 = arith.constant 0 : index
    %6 = vector.load %arg2[%c0_3, %c0_4] : memref<32x2xf32, #tpu.memory_space<vmem>>, vector<32x2xf32>
    %7 = vector.broadcast %5 : vector<32x1xf32> to vector<32x2xf32>
    %8 = arith.mulf %6, %7 : vector<32x2xf32>
    %cst_5 = arith.constant dense<0.000000e+00> : vector<2xf32>
    %9 = vector.multi_reduction <add>, %8, %cst_5 [0] : vector<32x2xf32> to vector<2xf32>
    %10 = vector.shape_cast %9 : vector<2xf32> to vector<1x2xf32>
    %c0_6 = arith.constant 0 : index
    %c0_7 = arith.constant 0 : index
    %11 = vector.load %arg3[%c0_6, %c0_7] : memref<1x2xf32, #tpu.memory_space<vmem>>, vector<1x2xf32>
    %12 = arith.addf %10, %11 : vector<1x2xf32>
    %cst_8 = arith.constant 0.000000e+00 : f32
    %13 = vector.broadcast %cst_8 : f32 to vector<1x2xf32>
    %14 = arith.cmpf ogt, %12, %13 : vector<1x2xf32>
    %cst_9 = arith.constant 2.000000e-01 : f32
    %15 = vector.broadcast %cst_9 : f32 to vector<1x2xf32>
    %16 = arith.mulf %15, %12 : vector<1x2xf32>
    %17 = arith.select %14, %12, %16 : vector<1x2xi1>, vector<1x2xf32>
    %c0_10 = arith.constant 0 : index
    %c0_11 = arith.constant 0 : index
    %18 = vector.load %arg4[%c0_10, %c0_11] : memref<32x2xf32, #tpu.memory_space<vmem>>, vector<32x2xf32>
    %19 = vector.broadcast %17 : vector<1x2xf32> to vector<32x2xf32>
    %20 = arith.mulf %18, %19 : vector<32x2xf32>
    %cst_12 = arith.constant dense<0.000000e+00> : vector<32xf32>
    %21 = vector.multi_reduction <add>, %20, %cst_12 [1] : vector<32x2xf32> to vector<32xf32>
    %22 = vector.shape_cast %21 : vector<32xf32> to vector<32x1xf32>
    %c0_13 = arith.constant 0 : index
    %c0_14 = arith.constant 0 : index
    %23 = vector.load %arg5[%c0_13, %c0_14] : memref<32x1xf32, #tpu.memory_space<vmem>>, vector<32x1xf32>
    %24 = arith.addf %22, %23 : vector<32x1xf32>
    %25 = arith.negf %24 : vector<32x1xf32>
    %26 = math.exp %25 : vector<32x1xf32>
    %cst_15 = arith.constant 1.000000e+00 : f32
    %27 = vector.broadcast %cst_15 : f32 to vector<32x1xf32>
    %28 = arith.addf %27, %26 : vector<32x1xf32>
    %29 = arith.divf %27, %28 : vector<32x1xf32>
    %30 = vector.broadcast %29 : vector<32x1xf32> to vector<32x256xf32>
    %31 = arith.mulf %1, %30 : vector<32x256xf32>
    %c0_16 = arith.constant 0 : index
    %c0_17 = arith.constant 0 : index
    %c0_18 = arith.constant 0 : index
    %32 = vector.load %arg6[%c0_16, %c0_17, %c0_18] : memref<1x32x256xf32, #tpu.memory_space<vmem>>, vector<1x32x256xf32>
    %33 = vector.shape_cast %32 : vector<1x32x256xf32> to vector<32x256xf32>
    %34 = vector.shape_cast %31 : vector<32x256xf32> to vector<1x32x256xf32>
    tpu.vector_store %arg6[%c0_16, %c0_17, %c0_18], %34 {strides = array<i32>} : memref<1x32x256xf32, #tpu.memory_space<vmem>>, vector<1x32x256xf32>,
    return
  }
  func.func @transform_0(%arg0: i32) -> (i32, i32, i32) {
    %c0_i32 = arith.constant 0 : i32
    %c0_i32_0 = arith.constant 0 : i32
    %c0_i32_1 = arith.constant 0 : i32
    return %arg0, %c0_i32, %c0_i32_0 : i32, i32, i32
  }
  func.func @transform_1(%arg0: i32) -> (i32, i32) {
    %c0_i32 = arith.constant 0 : i32
    %c0_i32_0 = arith.constant 0 : i32
    %c0_i32_1 = arith.constant 0 : i32
    return %c0_i32, %c0_i32_0 : i32, i32
  }
  func.func @transform_2(%arg0: i32) -> (i32, i32) {
    %c0_i32 = arith.constant 0 : i32
    %c0_i32_0 = arith.constant 0 : i32
    %c0_i32_1 = arith.constant 0 : i32
    return %c0_i32, %c0_i32_0 : i32, i32
  }
  func.func @transform_3(%arg0: i32) -> (i32, i32) {
    %c0_i32 = arith.constant 0 : i32
    %c0_i32_0 = arith.constant 0 : i32
    %c0_i32_1 = arith.constant 0 : i32
    return %c0_i32, %c0_i32_0 : i32, i32
  }
  func.func @transform_4(%arg0: i32) -> (i32, i32) {
    %c0_i32 = arith.constant 0 : i32
    %c0_i32_0 = arith.constant 0 : i32
    %c0_i32_1 = arith.constant 0 : i32
    return %c0_i32, %c0_i32_0 : i32, i32
  }
  func.func @transform_5(%arg0: i32) -> (i32, i32, i32) {
    %c0_i32 = arith.constant 0 : i32
    %c0_i32_0 = arith.constant 0 : i32
    %c0_i32_1 = arith.constant 0 : i32
    return %arg0, %c0_i32, %c0_i32_0 : i32, i32, i32
  }
}

</mosaic_0001>

<bundles_post_ra>
// kernel: tpu_custom_call.1
= control target key start
LH: loop header
LB: loop body
LE: loop exit
PB: predicated region body
PF: predicated region fallthrough
CT: control target
= control target key end

     0   :  { %10 = vsyncpa [#allocation3], 0  ;;  %s959_s0 = inlined_call_operand.hbm [shape: f32[2,32,256], index: 0, kind: input, shape index: {}]   ;;  %s960_s1 = inlined_call_operand.vmem [shape: f32[32,2], index: 1, kind: input, shape index: {}]   ;;  %s961_s2 = inlined_call_operand.vmem [shape: f32[1,2], index: 2, kind: input, shape index: {}]   ;;  %s962_s3 = inlined_call_operand.vmem [shape: f32[32,2], index: 3, kind: input, shape index: {}]   ;;  %s963_s4 = inlined_call_operand.vmem [shape: f32[32,1], index: 4, kind: input, shape index: {}]   ;;  %s964_s5 = inlined_call_operand.hbm [shape: f32[2,32,256], index: 5, kind: output, shape index: {}]  }
   0x1   :  { %12 = vsyncpa [#allocation3 + $0x1], 0 }
   0x2   :  { %13 = vsyncpa [#allocation4], 0 }
   0x3   :  { %15 = vsyncpa [#allocation4 + $0x1], 0  ;;  %s749_s18 = smov 0   ;;  %s751_s19 = smov 0  }
   0x4   :  { %s753_s20 = smov 0   ;;  %s755_s21 = smov 0  }
   0x5 LB: > { %s770_s22 = sadd.s32 4294967295, %s712_s21   ;;  %s526_s23 = sadd.s32 4294967294, %s712_s21   ;;  %s712_s21 = sphi %s755_s21, %s974_s21   ;;  %s708_s20 = sphi %s753_s20, %s973_s20   ;;  %s704_s19 = sphi %s751_s19, %s972_s19   ;;  %s700_s18 = sphi %s749_s18, %s971_s18  }
   0x6   : > { %s774_s24 = sadd.s32 1, %s712_s21   ;;  %s28_s25 = sadd.s32 1, %s708_s20 }
   0x7   : > { %s25_s26 = ssub.s32 %s712_s21, %s774_s24  ;;  %p35_p0 = scmp.ne.s32.totalorder %s708_s20, %s704_s19 }
   0x8   : > { %p26_p1 = scmp.eq.s32.totalorder %s25_s26, 0  ;;  %p36_p2 = scmp.eq.s32.totalorder %s712_s21, 0 }
   0x9   : > { %p41_p3 = scmp.ne.s32.totalorder %s704_s19, %s700_s18  ;;  %p42_p4 = scmp.eq.s32.totalorder %s770_s22, 0 }
   0xa   : > { %s786_s27 = scalar_select %p26_p1, %s708_s20, %s28_s25  }
   0xb   : > { %p788_p5 = por %p36_p2, %p35_p0  ;;  %p792_p6 = por %p42_p4, %p41_p3 }
   0xc   : > { %p149_p7 = scmp.eq.s32.totalorder %s770_s22, 1  ;;  %p155_p8 = scmp.eq.s32.totalorder %s526_s23, 1 }
   0xd   : > { %p558_p10 = scmp.lt.s32.totalorder %s712_s21, 2  ;;  %s187_s7 = sand.u32 1, %s708_s20  }
   0xe   : > { %p799_p11 = por %p149_p7, %p35_p0  ;;  %p803_p12 = por %p155_p8, %p41_p3 }
   0xf   : > { %s544_s8 = sshll.u32 %s712_s21, 6  ;;  %s529_s9 = sshll.u32 %s187_s7, 6 }
  0x10   : > { %s196_s12 = scalar_lea.hbm %s959_s0, %s544_s8  ;;  %s191_s14 = scalar_lea.vmem [#allocation2], %s529_s9 }
  0x11   : > { %s197_s13 = sshll.u32 %s196_s12, 4  ;;  %s199_s15 = sshll.u32 %s191_s14, 4  ;;  %s198_s13 = int_to_ptr.hbm [resolvable:$true] %s197_s13  ;;  %s200_s15 = int_to_ptr.vmem [resolvable:$true] %s199_s15 }
  0x12   : > { %p814_p13 = pnand %p558_p10, %p788_p5  ;;  %p532_p0 = scmp.ge.s32.totalorder %s712_s21, 1 }
  0x13   : > { %p207_p1 = scmp.lt.s32.totalorder %s712_s21, 3  ;;  %s188_s17 = scalar_lea.sflag [#allocation3], %s187_s7 }
  0x14   : > { %s616_s23 = sshra.s32 %s198_s13, 4  ;;  %p620_p3 = pneg %p814_p13  ;;  %s617_s23 = int_to_ptr.hbm [resolvable:$true] %s616_s23 }
  0x15   : > { %s618_s25 = scalar_lea.hbm %s617_s23, 64  ;;  %s623_s28 = scalar_lea.hbm %s959_s0, 128 }
  0x16   : > { %p619_p2 = scmp.ne.s32.totalorder %s617_s23, %s618_s25  ;;  %p624_p5 = scmp.lt.s32.totalorder %s617_s23, %s959_s0 }
  0x17   : > { %p625_p8 = scmp.lt.s32.totalorder %s623_s28, %s618_s25 }
  0x18   : > { %p621_p4 = pnand %p620_p3, %p619_p2 }
  0x19   : > { %p626_p10 = por %p625_p8, %p624_p5 }
  0x1a   : > { %p622_p7 = pneg %p621_p4 }
  0x1c   : > { %p627_p9 = pnand %p626_p10, %p622_p7 }
  0x1e   : > { %630 = shalt.err (!%p627_p9)
}
  0x1f   : > { %s714_s7 = smov 256   ;;  %s715_s11 = smov 16  }
  0x20   : > { %553 = dma.hbm_to_vmem [thread:$0]  (!%p814_p13), %s198_s13, 1024, %s200_s15, %s188_s17, %s714_s7, %s714_s7, %s715_s11  }
  0x21   : > { %p208_p2 = pnand %p532_p0, %p207_p1 }
  0x22   : > { %s835_s12 = sand.u32 (!%p208_p2), 1, %s704_s19  }
  0x23   : > { %211 = sbr.rel (%p208_p2) target bundleno = 481 (0x1e1), region = 40  ;;  %s533_s14 = sshll.u32 (!%p208_p2), %s835_s12, 6 }
  0x24   : > { %s214_s23 = scalar_lea.sflag (!%p208_p2), [#allocation3], %s835_s12  ;;  %s217_s25 = scalar_lea.vmem (!%p208_p2), [#allocation2], %s533_s14 }
  0x28   : > { %691 = dma.done.wait (%p792_p6), %s214_s23, 1024  }
  0x29   : > { %693 = vsyncadd (%p792_p6), %s214_s23, 4294966272  ;;  %v845_v0 = vld [vmem:[%s217_s25] sm:$0xff]  ;;  %v847_v1 = vld [vmem:[%s217_s25 + $0x8] sm:$0xff]  ;;  %vm277_vm0 = vcmask 15360   ;;  %v716_v58 = vmov 0   ;;  %s244_s23 = scalar_lea.vmem [#allocation5], %s533_s14 }
  0x2a   : > { %v849_v2 = vld [vmem:[%s217_s25 + $0x20] sm:$0xff]  ;;  %v253_v3 = vadd.f32 %v847_v1, %v845_v0  ;;  %v853_v4 = vld [vmem:[%s217_s25 + $0x28] sm:$0xff]  ;;  %v857_v6 = vld [vmem:[%s217_s25 + $0x10] sm:$0xff]  ;;  %599 = vset.pattern.permute.xlu1 %v716_v58  ;;  %597 = vset.pattern.permute.xlu2 %v716_v58  ;;  %s450_s15 = sshll.u32 %s244_s23, 4  ;;  %s438_s17 = scalar_lea.sflag [#allocation4], %s835_s12  ;;  %s451_s15 = int_to_ptr.vmem [resolvable:$true] %s450_s15 }
  0x2b   : > { %v259_v5 = vadd.f32 %v853_v4, %v849_v2  ;;  %v859_v7 = vld [vmem:[%s217_s25 + $0x18] sm:$0xff]  ;;  %v861_v8 = vld [vmem:[%s217_s25 + $0x30] sm:$0xff]  ;;  %v269_v15 = vld [vmem:[%s960_s1] sm:$0xff]  ;;  %598 = vset.pattern.permute.xlu0 %v716_v58  ;;  %s666_s9 = scalar_lea.hbm %s964_s5, 128 }
  0x2c   : > { %254 = vadd.xlane.f32.xlu0 %v253_v3  ;;  %v863_v9 = vld [vmem:[%s217_s25 + $0x38] sm:$0xff]  ;;  %v256_v10 = vadd.f32 %v859_v7, %v857_v6  ;;  %v271_v17 = vld [vmem:[%s960_s1 + $0x10] sm:$0xff]  ;;  %v270_v18 = vld [vmem:[%s960_s1 + $0x8] sm:$0xff]  ;;  %s545_s25 = sshll.u32 %s770_s22, 6 }
  0x2d   : > { %260 = vadd.xlane.f32.xlu1 %v259_v5  ;;  %v262_v11 = vadd.f32 %v863_v9, %v861_v8  ;;  %v272_v22 = vld [vmem:[%s960_s1 + $0x18] sm:$0xff]  ;;  %v291_v40 = vld [vmem:[%s961_s2] sm:$0x1]  ;;  %v298_v46 = vld [vmem:[%s962_s3 + $0x10] sm:$0xff]  ;;  %s449_s13 = scalar_lea.hbm %s964_s5, %s545_s25 }
  0x2e   : > { %v299_v45 = vld [vmem:[%s962_s3 + $0x18] sm:$0xff]  ;;  %v296_v47 = vld [vmem:[%s962_s3] sm:$0xff]  ;;  %v297_v55 = vld [vmem:[%s962_s3 + $0x8] sm:$0xff]  ;;  %s452_s16 = sshll.u32 %s449_s13, 4  ;;  %s453_s16 = int_to_ptr.hbm [resolvable:$true] %s452_s16 }
  0x2f   : > { %v320_v59 = vld [vmem:[%s963_s4 + $0x18] sm:$0xff]  ;;  %v319_v60 = vld [vmem:[%s963_s4 + $0x10] sm:$0xff]  ;;  %v317_v61 = vld [vmem:[%s963_s4] sm:$0xff]  ;;  %s660_s26 = sshra.s32 %s453_s16, 4  ;;  %s661_s26 = int_to_ptr.hbm [resolvable:$true] %s660_s26 }
  0x30   : > { %s662_s22 = scalar_lea.hbm %s661_s26, 64  ;;  %p667_p0 = scmp.lt.s32.totalorder %s661_s26, %s964_s5 }
  0x31   : > { %p663_p6 = scmp.ne.s32.totalorder %s661_s26, %s662_s22  ;;  %p668_p1 = scmp.lt.s32.totalorder %s666_s9, %s662_s22 }
  0x33   : > { %p664_p9 = pnand %p663_p6, %p799_p11  ;;  %p669_p3 = por %p668_p1, %p667_p0 }
  0x34   : > { %257 = vadd.xlane.f32.xlu0 %v256_v10 }
  0x35   : > { %263 = vadd.xlane.f32.xlu1 %v262_v11  ;;  %p665_p13 = pneg %p664_p9 }
  0x37   : > { %p670_p4 = pnand %p669_p3, %p665_p13 }
  0x9f   : > { %v255_v12 = vpop.xlane.xlu0 %254 }
  0xa0   : > { %v261_v13 = vpop.xlane.xlu1 %260  ;;  %v265_v14 = vmul.f32 0.00390625, %v255_v12 }
  0xa1   : > { %v267_v16 = vmul.f32 0.00390625, %v261_v13 }
  0xa2   : > { %v273_v20 = vmul.f32 %v269_v15, %v265_v14  ;;  %v318_v15 = vld [vmem:[%s963_s4 + $0x8] sm:$0xff] }
  0xa3   : > { %v275_v25 = vmul.f32 %v271_v17, %v267_v16 }
  0xa4   : > { %v278_v28 = vsel %vm277_vm0, %v273_v20, 0.0 }
  0xa5   : > { %v281_v31 = vsel %vm277_vm0, %v275_v25, 0.0 }
  0xa7   : > { %v258_v19 = vpop.xlane.xlu0 %257 }
  0xa8   : > { %v266_v21 = vmul.f32 0.00390625, %v258_v19  ;;  %v264_v23 = vpop.xlane.xlu1 %263 }
  0xa9   : > { %v268_v24 = vmul.f32 0.00390625, %v264_v23 }
  0xaa   : > { %v274_v26 = vmul.f32 %v270_v18, %v266_v21 }
  0xab   : > { %v276_v27 = vmul.f32 %v272_v22, %v268_v24 }
  0xac   : > { %v279_v29 = vsel %vm277_vm0, %v274_v26, 0.0 }
  0xad   : > { %v280_v30 = vadd.f32 %v279_v29, %v278_v28  ;;  %v283_v32 = vsel %vm277_vm0, %v276_v27, 0.0 }
  0xaf   : > { %v282_v33 = vadd.f32 %v281_v31, %v280_v30 }
  0xb1   : > { %v284_v34 = vadd.f32 %v283_v32, %v282_v33 }
  0xb3   : > { %v285_v35 = vrot.slane %v284_v34, 4 }
  0xb5   : > { %v286_v36 = vadd.f32 %v285_v35, %v284_v34 }
  0xb7   : > { %v287_v37 = vrot.slane %v286_v36, 2 }
  0xb9   : > { %v288_v38 = vadd.f32 %v287_v37, %v286_v36 }
  0xbb   : > { %v289_v39 = vrot.slane %v288_v38, 1 }
  0xbd   : > { %v290_v41 = vadd.f32 %v289_v39, %v288_v38 }
  0xbf   : > { %v292_v42 = vadd.f32 %v291_v40, %v290_v41 }
  0xc1   : > { %vm293_vm1 = vcmp.gt.f32.partialorder %v292_v42, 0.0  ;;  %v294_v43 = vmul.f32 0.2, %v292_v42 }
  0xc3   : > { %v295_v44 = vsel %vm293_vm1, %v292_v42, %v294_v43 }
  0xc4   : > { %v300_v48 = vperm.slane %v295_v44, 0 }
  0xc6   : > { %v304_v49 = vmul.f32 %v300_v48, %v299_v45  ;;  %v303_v50 = vmul.f32 %v300_v48, %v298_v46  ;;  %v301_v51 = vmul.f32 %v300_v48, %v296_v47  ;;  %v302_v56 = vmul.f32 %v300_v48, %v297_v55 }
  0xc8   : > { %v314_v52 = vsel %vm277_vm0, %v304_v49, 0.0  ;;  %v311_v53 = vsel %vm277_vm0, %v303_v50, 0.0  ;;  %v305_v54 = vsel %vm277_vm0, %v301_v51, 0.0  ;;  %v308_v57 = vsel %vm277_vm0, %v302_v56, 0.0 }
  0xc9   : > { %315 = vadd.xlane.f32.xlu1 %v314_v52  ;;  %312 = vadd.xlane.f32.xlu0 %v311_v53 }
  0xca   : > { %306 = vadd.xlane.f32.xlu2 %v305_v54 }
  0xd2   : > { %309 = vadd.xlane.f32.xlu2 %v308_v57 }
 0x13c   : > { %v316_v62 = vpop.xlane.xlu1 %315  ;;  %v313_v63 = vpop.xlane.xlu0 %312 }
 0x13d   : > { %v324_v3 = vadd.f32 %v320_v59, %v316_v62  ;;  %v323_v5 = vadd.f32 %v319_v60, %v313_v63  ;;  %v307_v10 = vpop.xlane.xlu2 %306 }
 0x13e   : > { %v321_v11 = vadd.f32 %v317_v61, %v307_v10 }
 0x13f   : > { %v538_v12 = vmul.f32 -1.442695, %v324_v3  ;;  %v537_v13 = vmul.f32 -1.442695, %v323_v5 }
 0x140   : > { %v535_v14 = vmul.f32 -1.442695, %v321_v11 }
 0x141   : > { %600 = vpow2.f32 %v538_v12 }
 0x142   : > { %602 = vpow2.f32 %v537_v13 }
 0x143   : > { %604 = vpow2.f32 %v535_v14 }
 0x145   : > { %v310_v16 = vpop.xlane.xlu2 %309 }
 0x146   : > { %v322_v17 = vadd.f32 %v318_v15, %v310_v16 }
 0x147   : > { %v601_v18 = vpop.eup %600 }
 0x148   : > { %v603_v19 = vpop.eup %602  ;;  %v340_v20 = vadd.f32 1.0, %v601_v18  ;;  %v536_v23 = vmul.f32 -1.442695, %v322_v17 }
 0x149   : > { %v605_v21 = vpop.eup %604  ;;  %v339_v22 = vadd.f32 1.0, %v603_v19 }
 0x14a   : > { %606 = vrcp.f32 %v340_v20  ;;  %v337_v24 = vadd.f32 1.0, %v605_v21  ;;  %v397_v54 = vand.u32 2147483648, %v340_v20  ;;  %vm391_vm11 = vweird.f32 %v340_v20 }
 0x14b   : > { %608 = vrcp.f32 %v339_v22  ;;  %v380_v34 = vand.u32 2147483647, %v339_v22  ;;  %v382_v35 = vand.u32 2147483648, %v339_v22  ;;  %vm376_vm4 = vweird.f32 %v339_v22 }
 0x14c   : > { %610 = vrcp.f32 %v337_v24  ;;  %v352_v39 = vand.u32 2147483648, %v337_v24  ;;  %v350_v41 = vand.u32 2147483647, %v337_v24  ;;  %vm346_vm6 = vweird.f32 %v337_v24 }
 0x14d   : > { %612 = vpow2.f32 %v536_v23  ;;  %v383_v43 = vor.u32 1.1754944e-38, %v382_v35  ;;  %vm381_vm7 = vcmp.eq.f32.partialorder %v380_v34, 8.507059e+37  ;;  %v395_v55 = vand.u32 2147483647, %v340_v20 }
 0x14e   : > { %v353_v47 = vor.u32 1.1754944e-38, %v352_v39  ;;  %vm351_vm9 = vcmp.eq.f32.partialorder %v350_v41, 8.507059e+37  ;;  %v398_v61 = vor.u32 1.1754944e-38, %v397_v54 }
 0x14f   : > { %vm396_vm14 = vcmp.eq.f32.partialorder %v395_v55, 8.507059e+37 }
 0x150   : > { %v607_v25 = vpop.eup %606 }
 0x151   : > { %v609_v26 = vpop.eup %608  ;;  %v387_v27 = vmul.f32 %v607_v25, %v340_v20  ;;  %vm392_vm10 = vweird.f32 %v607_v25 }
 0x152   : > { %v611_v28 = vpop.eup %610  ;;  %v372_v29 = vmul.f32 %v609_v26, %v339_v22  ;;  %vm377_vm2 = vweird.f32 %v609_v26  ;;  %vm393_vm12 = vmor %vm391_vm11, %vm392_vm10 }
 0x153   : > { %v613_v30 = vpop.eup %612  ;;  %v342_v31 = vmul.f32 %v611_v28, %v337_v24  ;;  %v388_v37 = vsub.f32 1.0, %v387_v27  ;;  %vm347_vm3 = vweird.f32 %v611_v28  ;;  %vm378_vm5 = vmor %vm376_vm4, %vm377_vm2 }
 0x154   : > { %v338_v32 = vadd.f32 1.0, %v613_v30  ;;  %v373_v33 = vsub.f32 1.0, %v372_v29  ;;  %vm348_vm8 = vmor %vm346_vm6, %vm347_vm3 }
 0x155   : > { %v343_v36 = vsub.f32 1.0, %v342_v31  ;;  %v389_v45 = vmul.f32 %v607_v25, %v388_v37 }
 0x156   : > { %614 = vrcp.f32 %v338_v32  ;;  %v374_v38 = vmul.f32 %v609_v26, %v373_v33  ;;  %v367_v57 = vand.u32 2147483648, %v338_v32  ;;  %v365_v60 = vand.u32 2147483647, %v338_v32 }
 0x157   : > { %v344_v40 = vmul.f32 %v611_v28, %v343_v36  ;;  %v390_v52 = vadd.f32 %v607_v25, %v389_v45  ;;  %vm361_vm15 = vweird.f32 %v338_v32 }
 0x158   : > { %v375_v42 = vadd.f32 %v609_v26, %v374_v38  ;;  %v368_v3 = vor.u32 1.1754944e-38, %v367_v57  ;;  %vm366_vm1 = vcmp.eq.f32.partialorder %v365_v60, 8.507059e+37 }
 0x159   : > { %v345_v44 = vadd.f32 %v611_v28, %v344_v40  ;;  %v394_v58 = vsel %vm393_vm12, %v607_v25, %v390_v52 }
 0x15a   : > { %v379_v46 = vsel %vm378_vm5, %v609_v26, %v375_v42  ;;  %v399_v63 = vsel %vm396_vm14, %v398_v61, %v394_v58 }
 0x15b   : > { %v384_v48 = vsel %vm381_vm7, %v383_v43, %v379_v46  ;;  %v349_v49 = vsel %vm348_vm8, %v611_v28, %v345_v44 }
 0x15c   : > { %v615_v50 = vpop.eup %614  ;;  %413 = vperm.xlu1 %599, %v384_v48   ;;  %v354_v51 = vsel %vm351_vm9, %v353_v47, %v349_v49 }
 0x15d   : > { %403 = vperm.xlu2 %597, %v354_v51   ;;  %v357_v53 = vmul.f32 %v615_v50, %v338_v32  ;;  %vm362_vm13 = vweird.f32 %v615_v50 }
 0x15e   : > { %vm363_vm0 = vmor %vm361_vm15, %vm362_vm13 }
 0x15f   : > { %v358_v56 = vsub.f32 1.0, %v357_v53 }
 0x161   : > { %v359_v59 = vmul.f32 %v615_v50, %v358_v56 }
 0x163   : > { %v360_v62 = vadd.f32 %v615_v50, %v359_v59 }
 0x165   : > { %418 = vperm.xlu2 %597, %v399_v63   ;;  %v364_v5 = vsel %vm363_vm0, %v615_v50, %v360_v62 }
 0x166   : > { %v369_v10 = vsel %vm366_vm1, %v368_v3, %v364_v5 }
 0x167   : > { %408 = vperm.xlu0 %598, %v369_v10  }
 0x1b7   : > { %v404_v11 = vpop.permute.xlu2 %403 }
 0x1b8   : > { %v421_v12 = vmul.f32 %v404_v11, %v845_v0  ;;  %v422_v13 = vmul.f32 %v404_v11, %v847_v1 }
 0x1ba   : > { %429 = vst [vmem:[%s244_s23] sm:$0xff] %v421_v12 }
 0x1bb   : > { %430 = vst [vmem:[%s244_s23 + $0x8] sm:$0xff] %v422_v13 }
 0x1bf   : > { %v419_v14 = vpop.permute.xlu2 %418 }
 0x1c0   : > { %v427_v15 = vmul.f32 %v419_v14, %v861_v8  ;;  %v428_v16 = vmul.f32 %v419_v14, %v863_v9 }
 0x1c2   : > { %435 = vst [vmem:[%s244_s23 + $0x30] sm:$0xff] %v427_v15 }
 0x1c3   : > { %436 = vst [vmem:[%s244_s23 + $0x38] sm:$0xff] %v428_v16 }
 0x1ce   : > { %v414_v17 = vpop.permute.xlu1 %413 }
 0x1cf   : > { %v425_v18 = vmul.f32 %v414_v17, %v849_v2  ;;  %v426_v19 = vmul.f32 %v414_v17, %v853_v4 }
 0x1d1   : > { %433 = vst [vmem:[%s244_s23 + $0x20] sm:$0xff] %v425_v18 }
 0x1d2   : > { %434 = vst [vmem:[%s244_s23 + $0x28] sm:$0xff] %v426_v19 }
 0x1d9   : > { %v409_v0 = vpop.permute.xlu0 %408 }
 0x1da   : > { %v423_v1 = vmul.f32 %v409_v0, %v857_v6  ;;  %v424_v8 = vmul.f32 %v409_v0, %v859_v7 }
 0x1dc   : > { %431 = vst [vmem:[%s244_s23 + $0x10] sm:$0xff] %v423_v1 }
 0x1dd   : > { %432 = vst [vmem:[%s244_s23 + $0x18] sm:$0xff] %v424_v8 }
 0x1de   : > { %673 = shalt.err (!%p670_p4)
}
 0x1df   : > { %s717_s12 = smov 256   ;;  %s718_s11 = smov 16  }
 0x1e0   : > { %548 = dma.vmem_to_hbm [thread:$0]  (%p799_p11), %s451_s15, 1024, %s453_s16, %s438_s17, %s717_s12, %s717_s12, %s718_s11  }
 0x1e1 PF: > { %s467_s23 = sand.u32 1, %s700_s18   ;;  %p970_p7 = scmp.ge.s32.totalorder %s712_s21, 2 }
 0x1e2   : > { %s468_s25 = scalar_lea.sflag [#allocation4], %s467_s23 }
 0x1e3   : > { %p555_p5 = pnand %p970_p7, %p803_p12 }
 0x1e5   : > { %p556_p8 = pneg %p555_p5 }
 0x1e7   : > { %695 = dma.done.wait (%p556_p8), %s468_s25, 1024  }
 0x1e8   : > { %697 = vsyncadd (%p556_p8), %s468_s25, 4294966272  ;;  %p18_p10 = scmp.ge.s32.totalorder %s774_s24, 4   ;;  %s971_s18 = smov %s704_s19 }
 0x1e9   : > { %s972_s19 = smov %s708_s20  ;;  %s973_s20 = smov %s786_s27 }
 0x1ea   : > { %s974_s21 = smov %s774_s24  ;;  %20 = sbr.rel (!%p18_p10) target bundleno = 5 (0x5), region = 85 }
 0x1ef   :  { %474 = vsyncpa [#allocation3], 1 }
 0x1f0   :  { %476 = vsyncpa [#allocation3 + $0x1], 1 }
 0x1f1   :  { %477 = vsyncpa [#allocation4], 1 }
 0x1f2   :  { %479 = vsyncpa [#allocation4 + $0x1], 1 }

</bundles_post_ra>
